<compile_context>
chip_gen: v7x
topology: tpu7x:2x2x1
jax: 0.10.0
libtpu: 0.0.40
codegen_flags: <defaults>
</compile_context>

<pallas_src>
import math
import jax
import jax.numpy as jnp
from jax.experimental import pallas as pl
from jax.experimental.pallas import tpu as pltpu

# ---- model / problem configuration (mirrors the voxaboxen `args`) ----------
BATCH = 8              # batched so B*T_enc = 256 rows (fills row tiles)
AUDIO_T = 512          # waveform length (time @ audio sr)
SCALE_FACTOR = 16      # args.scale_factor  (encoder time downsampling)
EMBED_DIM = 32         # encoder.embedding_dim
N_CLASSES = 4          # len(args.label_set)
PRED_SCALE = 1         # args.prediction_scale_factor (Conv1d kernel == stride)
BIDIRECTIONAL = True   # args.bidirectional -> rev_detection_head is computed
STEREO = False         # args.stereo (mono path implemented)

T_ENC = AUDIO_T // SCALE_FACTOR                  # encoder-rate frames
EXPECTED_DUR = math.ceil(AUDIO_T / SCALE_FACTOR) # expected_dur_output
T_OUT = T_ENC // PRED_SCALE                      # head-output frames
C_OUT = 2 + N_CLASSES                            # det + reg + classes
N_HEAD_OUT = 2 * C_OUT                           # fwd + rev heads fused

ROWS = BATCH * T_ENC                             # rows of the patch matrix
ROW_TILE = 128 if ROWS % 128 == 0 else ROWS      # rows per grid step

# Our synthetic encoder emits exactly EXPECTED_DUR frames, so pad == 0 and the
# F.pad(..., mode='reflect') branch of the PyTorch forward is a no-op here.
# TODO(synk): reflect-pad of encoder features is skipped because pad == 0 by
# construction for this synthetic encoder.
assert T_ENC == EXPECTED_DUR
# TODO(synk): PRED_SCALE > 1 would need an in-kernel (TM, D)->(TM/P, P*D)
# reshape; kept at 1 (the common voxaboxen setting).
assert PRED_SCALE == 1
assert ROWS % ROW_TILE == 0 and ROW_TILE % 8 == 0


def detection_model_kernel(x_ref, w_enc_ref, w_heads_ref, b_heads_ref,
                           logits_ref):
    # Encoder: strided "patch embedding" Conv1d with kernel == stride ==
    # SCALE_FACTOR, expressed as a matmul on the pre-reshaped (rows, K) slab.
    # TODO(synk): the real voxaboxen encoder (AVES / HuBERT) is replaced by a
    # deterministic linear patch-embed stand-in (no checkpoint loading).
    # (For large batches, cast x/w to bf16 here and keep f32 accumulation.)
    feats = jnp.dot(x_ref[...], w_enc_ref[...],
                    preferred_element_type=jnp.float32)

    # Fused forward + reverse DetectionHead (Conv1d, k == stride == 1):
    # one matmul into a single lane-dense (rows, 2*C_OUT) slab.  The encoder
    # bias is already folded into b_heads_ref by the wrapper.
    logits = jnp.dot(feats, w_heads_ref[...],
                     preferred_element_type=jnp.float32) + b_heads_ref[...]

    # torch.sigmoid on the two detection columns (0 and C_OUT) via lane mask;
    # everything else passes through as raw logits / regression.
    col = jax.lax.broadcasted_iota(jnp.int32, logits.shape, 1)
    is_det = (col == 0) | (col == C_OUT)
    logits_ref[...] = jnp.where(is_det, jax.nn.sigmoid(logits), logits)


@jax.jit
def detection_model_forward(x, params):
    """Returns (detection_probs, regression, class_logits,
                rev_detection_probs, rev_regression, rev_class_logits)."""
    w_enc, b_enc, w_h, b_h, w_rh, b_rh = params

    # --- fuse the two heads + fold the encoder bias (wrapper-side, tiny) ----
    w_heads = jnp.concatenate([w_h, w_rh], axis=1)           # (P*D, 2*C_OUT)
    b_heads = jnp.concatenate([b_h, b_rh], axis=1)           # (1, 2*C_OUT)
    b_fused = jnp.tile(b_enc, (1, PRED_SCALE)) @ w_heads + b_heads

    # --- mean-centering + HBM-layout reshape (no in-kernel relayout) --------
    xc = x - jnp.mean(x, axis=-1, keepdims=True)
    x_p = xc.reshape(ROWS, SCALE_FACTOR)                     # (B*T_enc, K)

    flops = (2 * ROWS * SCALE_FACTOR * EMBED_DIM
             + 2 * ROWS * PRED_SCALE * EMBED_DIM * N_HEAD_OUT)
    bytes_accessed = 4 * (x_p.size + w_enc.size + w_heads.size + b_fused.size
                          + (ROWS // PRED_SCALE) * N_HEAD_OUT)
    cost = pl.CostEstimate(flops=flops,
                           transcendentals=ROWS * N_HEAD_OUT,
                           bytes_accessed=bytes_accessed)

    grid_spec = pltpu.PrefetchScalarGridSpec(
        num_scalar_prefetch=0,
        grid=(ROWS // ROW_TILE,),
        in_specs=[
            pl.BlockSpec((ROW_TILE, SCALE_FACTOR), lambda i: (i, 0)),
            pl.BlockSpec((SCALE_FACTOR, EMBED_DIM), lambda i: (0, 0)),
            pl.BlockSpec((PRED_SCALE * EMBED_DIM, N_HEAD_OUT), lambda i: (0, 0)),
            pl.BlockSpec((1, N_HEAD_OUT), lambda i: (0, 0)),
        ],
        out_specs=pl.BlockSpec((ROW_TILE // PRED_SCALE, N_HEAD_OUT),
                               lambda i: (i, 0)),
    )

    logits = pl.pallas_call(
        detection_model_kernel,
        out_shape=jax.ShapeDtypeStruct((ROWS // PRED_SCALE, N_HEAD_OUT),
                                       jnp.float32),
        grid_spec=grid_spec,
        compiler_params=pltpu.CompilerParams(
            dimension_semantics=("parallel",)),   # shards across 2 TCs on v7x
        cost_estimate=cost,
    )(x_p, w_enc, w_heads, b_fused)

    # --- split the single lane-dense slab back into the module's outputs ----
    logits = logits.reshape(BATCH, T_OUT, N_HEAD_OUT)
    det = logits[:, :, 0]                     # sigmoid already applied
    reg = logits[:, :, 1]
    cls = logits[:, :, 2:C_OUT]
    rdet = logits[:, :, C_OUT]                # sigmoid already applied
    rreg = logits[:, :, C_OUT + 1]
    rcls = logits[:, :, C_OUT + 2:]
    return det, reg, cls, rdet, rreg, rcls


def reference_forward(x, params):
    """Pure-JAX reference mirroring the PyTorch forward semantics."""
    w_enc, b_enc, w_h, b_h, w_rh, b_rh = params
    xc = x - jnp.mean(x, axis=-1, keepdims=True)
    patches = xc.reshape(BATCH * T_ENC, SCALE_FACTOR)
    feats = patches @ w_enc + b_enc
    feats_p = feats.reshape(BATCH * T_OUT, PRED_SCALE * EMBED_DIM)

    def head(w, b):
        logits = feats_p @ w + b
        det = jax.nn.sigmoid(logits[:, 0]).reshape(BATCH, T_OUT)
        reg = logits[:, 1].reshape(BATCH, T_OUT)
        cls = logits[:, 2:].reshape(BATCH, T_OUT, N_CLASSES)
        return det, reg, cls

    d, r, c = head(w_h, b_h)
    rd, rr, rc = head(w_rh, b_rh)
    return d, r, c, rd, rr, rc


def make_params(key):
    ks = jax.random.split(key, 6)
    # encoder patch-embed weight: W_enc[k, d] == torch conv1d weight[d, 0, k]
    w_enc = (jax.random.normal(ks[0], (SCALE_FACTOR, EMBED_DIM), jnp.float32)
             / math.sqrt(SCALE_FACTOR))
    b_enc = 0.01 * jax.random.normal(ks[1], (1, EMBED_DIM), jnp.float32)
    # head weight: W[k*D + c, o] == torch conv1d weight[o, c, k]
    fan_in = PRED_SCALE * EMBED_DIM
    w_h = (jax.random.normal(ks[2], (fan_in, C_OUT), jnp.float32)
           / math.sqrt(fan_in))
    b_h = 0.01 * jax.random.normal(ks[3], (1, C_OUT), jnp.float32)
    w_rh = (jax.random.normal(ks[4], (fan_in, C_OUT), jnp.float32)
            / math.sqrt(fan_in))
    b_rh = 0.01 * jax.random.normal(ks[5], (1, C_OUT), jnp.float32)
    return (w_enc, b_enc, w_h, b_h, w_rh, b_rh)


if __name__ == "__main__":
    key = jax.random.PRNGKey(0)
    kx, kp = jax.random.split(key)
    x = jax.random.normal(kx, (BATCH, AUDIO_T), jnp.float32)
    params = make_params(kp)

    outs = jax.block_until_ready(detection_model_forward(x, params))
    refs = reference_forward(x, params)

    names = ["det_probs", "regression", "class_logits",
             "rev_det_probs", "rev_regression", "rev_class_logits"]
    for name, o, r in zip(names, outs, refs):
        assert o.shape == r.shape, (name, o.shape, r.shape)
        assert jnp.allclose(o, r, atol=2e-4, rtol=2e-4), name

    print("KERNEL_OK")
</pallas_src>

<mosaic_0001>
module attributes {stable_mosaic.version = 11 : i64} {
  func.func @detection_model_kernel(%arg0: i32, %arg1: memref<128x16xf32, #tpu.memory_space<vmem>>, %arg2: memref<16x32xf32, #tpu.memory_space<vmem>>, %arg3: memref<32x12xf32, #tpu.memory_space<vmem>>, %arg4: memref<1x12xf32, #tpu.memory_space<vmem>>, %arg5: memref<128x12xf32, #tpu.memory_space<vmem>>) attributes {dimension_semantics = [#tpu.dimension_semantics<parallel>], iteration_bounds = array<i64: 2>, scalar_prefetch = 0 : i64, scratch_operands = 0 : i64, tpu.core_type = #tpu.core_type<tc>, window_params = [{transform_indices = @transform_0, window_bounds = array<i64: 128, 16>}, {pipeline_mode = #tpu.pipeline_mode<synchronous>, transform_indices = @transform_1, window_bounds = array<i64: 16, 32>}, {pipeline_mode = #tpu.pipeline_mode<synchronous>, transform_indices = @transform_2, window_bounds = array<i64: 32, 12>}, {pipeline_mode = #tpu.pipeline_mode<synchronous>, transform_indices = @transform_3, window_bounds = array<i64: 1, 12>}, {transform_indices = @transform_4, window_bounds = array<i64: 128, 12>}]} {
    %c0 = arith.constant 0 : index
    %c0_0 = arith.constant 0 : index
    %0 = vector.load %arg1[%c0, %c0_0] : memref<128x16xf32, #tpu.memory_space<vmem>>, vector<128x16xf32>
    %c0_1 = arith.constant 0 : index
    %c0_2 = arith.constant 0 : index
    %1 = vector.load %arg2[%c0_1, %c0_2] : memref<16x32xf32, #tpu.memory_space<vmem>>, vector<16x32xf32>
    %cst = arith.constant dense<0.000000e+00> : vector<128x32xf32>
    %2 = tpu.matmul %0, %1, %cst {dimension_numbers = #tpu.dot_dimension_numbers<[1], [0], [0], [1], [0, 0, 1, 1], [], []>} : vector<128x16xf32>, vector<16x32xf32>, vector<128x32xf32> -> vector<128x32xf32>
    %c0_3 = arith.constant 0 : index
    %c0_4 = arith.constant 0 : index
    %3 = vector.load %arg3[%c0_3, %c0_4] : memref<32x12xf32, #tpu.memory_space<vmem>>, vector<32x12xf32>
    %cst_5 = arith.constant dense<0.000000e+00> : vector<128x12xf32>
    %4 = tpu.matmul %2, %3, %cst_5 {dimension_numbers = #tpu.dot_dimension_numbers<[1], [0], [0], [1], [0, 0, 1, 1], [], []>} : vector<128x32xf32>, vector<32x12xf32>, vector<128x12xf32> -> vector<128x12xf32>
    %c0_6 = arith.constant 0 : index
    %c0_7 = arith.constant 0 : index
    %5 = vector.load %arg4[%c0_6, %c0_7] : memref<1x12xf32, #tpu.memory_space<vmem>>, vector<1x12xf32>
    %6 = vector.broadcast %5 : vector<1x12xf32> to vector<128x12xf32>
    %7 = arith.addf %4, %6 : vector<128x12xf32>
    %8 = tpu.iota {dimensions = array<i32: 1>} : vector<128x12xi32>
    %c0_i32 = arith.constant 0 : i32
    %9 = vector.broadcast %c0_i32 : i32 to vector<128x12xi32>
    %10 = arith.cmpi eq, %8, %9 : vector<128x12xi32>
    %c6_i32 = arith.constant 6 : i32
    %11 = vector.broadcast %c6_i32 : i32 to vector<128x12xi32>
    %12 = arith.cmpi eq, %8, %11 : vector<128x12xi32>
    %13 = arith.ori %10, %12 : vector<128x12xi1>
    %14 = arith.negf %7 : vector<128x12xf32>
    %15 = math.exp %14 : vector<128x12xf32>
    %cst_8 = arith.constant 1.000000e+00 : f32
    %16 = vector.broadcast %cst_8 : f32 to vector<128x12xf32>
    %17 = arith.addf %16, %15 : vector<128x12xf32>
    %18 = arith.divf %16, %17 : vector<128x12xf32>
    %19 = arith.select %13, %18, %7 : vector<128x12xi1>, vector<128x12xf32>
    %c0_9 = arith.constant 0 : index
    %c0_10 = arith.constant 0 : index
    %20 = vector.load %arg5[%c0_9, %c0_10] : memref<128x12xf32, #tpu.memory_space<vmem>>, vector<128x12xf32>
    tpu.vector_store %arg5[%c0_9, %c0_10], %19 {strides = array<i32>} : memref<128x12xf32, #tpu.memory_space<vmem>>, vector<128x12xf32>,
    return
  }
  func.func @transform_0(%arg0: i32) -> (i32, i32) {
    %c0_i32 = arith.constant 0 : i32
    %c0_i32_0 = arith.constant 0 : i32
    return %arg0, %c0_i32 : i32, i32
  }
  func.func @transform_1(%arg0: i32) -> (i32, i32) {
    %c0_i32 = arith.constant 0 : i32
    %c0_i32_0 = arith.constant 0 : i32
    %c0_i32_1 = arith.constant 0 : i32
    return %c0_i32, %c0_i32_0 : i32, i32
  }
  func.func @transform_2(%arg0: i32) -> (i32, i32) {
    %c0_i32 = arith.constant 0 : i32
    %c0_i32_0 = arith.constant 0 : i32
    %c0_i32_1 = arith.constant 0 : i32
    return %c0_i32, %c0_i32_0 : i32, i32
  }
  func.func @transform_3(%arg0: i32) -> (i32, i32) {
    %c0_i32 = arith.constant 0 : i32
    %c0_i32_0 = arith.constant 0 : i32
    %c0_i32_1 = arith.constant 0 : i32
    return %c0_i32, %c0_i32_0 : i32, i32
  }
  func.func @transform_4(%arg0: i32) -> (i32, i32) {
    %c0_i32 = arith.constant 0 : i32
    %c0_i32_0 = arith.constant 0 : i32
    return %arg0, %c0_i32 : i32, i32
  }
}

</mosaic_0001>

<bundles_post_ra>
// kernel: detection_model_forward.1
= control target key start
LH: loop header
LB: loop body
LE: loop exit
PB: predicated region body
PF: predicated region fallthrough
CT: control target
= control target key end

     0   :  { %s1083_s15 = smov 0   ;;  %s1330_s0 = inlined_call_operand.vmem [shape: f32[256,16], index: 0, kind: input, shape index: {}]   ;;  %s1331_s1 = inlined_call_operand.vmem [shape: f32[16,32], index: 1, kind: input, shape index: {}]   ;;  %s1332_s2 = inlined_call_operand.vmem [shape: f32[32,12], index: 2, kind: input, shape index: {}]   ;;  %s1333_s3 = inlined_call_operand.vmem [shape: f32[1,12], index: 3, kind: input, shape index: {}]   ;;  %s1334_s4 = inlined_call_operand.vmem [shape: f32[256,12], index: 4, kind: output, shape index: {}]  }
   0x1 LB: > { %s808_s16 = sadd.s32 4294967295, %s1056_s15   ;;  %p812_p0 = scmp.ge.s32.totalorder %s1056_s15, 1  ;;  %s1056_s15 = sphi %s1083_s15, %s14_s15  }
   0x2   : > { %p163_p1 = scmp.lt.s32.totalorder %s1056_s15, 3 }
   0x4   : > { %p164_p2 = pnand %p812_p0, %p163_p1 }
   0x5   : > { %v217_v0 = vld [vmem:[%s1331_s1] sm:$0xff] (!%p164_p2)  ;;  %v218_v1 = vld [vmem:[%s1331_s1 + $0x8] sm:$0xff] (!%p164_p2)  ;;  %s813_s21 = sshll.u32 (!%p164_p2), %s808_s16, 4  ;;  %v415_v5 = vld [vmem:[%s1332_s2 + $0x10] sm:$0xff] (!%p164_p2)  ;;  %vm219_vm0 = vcmask (!%p164_p2), 130048   ;;  %vm424_vm1 = vcmask (!%p164_p2), 261120  }
   0x6   : > { %167 = sbr.rel (%p164_p2) target bundleno = 505 (0x1f9), region = 36  ;;  %v413_v2 = vld [vmem:[%s1332_s2] sm:$0xff] (!%p164_p2)  ;;  %v966_v3 = vpack.c.bf16 (!%p164_p2), %v218_v1, %v217_v0  ;;  %p190_p3 = scmp.lt.s32.totalorder (!%p164_p2), %s813_s21, 31  ;;  %v414_v4 = vld [vmem:[%s1332_s2 + $0x8] sm:$0xff] (!%p164_p2)  ;;  %v416_v6 = vld [vmem:[%s1332_s2 + $0x18] sm:$0xff] (!%p164_p2)  ;;  %v618_v1 = vlaneseq (!%p164_p2)  ;;  %vm735_vm5 = vcmask (!%p164_p2), 97280  }
   0x7   : > { %v970_v7 = vpack.c.bf16 (!%p164_p2), %v414_v4, %v413_v2  ;;  %v974_v8 = vpack.c.bf16 (!%p164_p2), %v416_v6, %v415_v5  ;;  %v1170_v41 = vld [vmem:[%s1333_s3] ss:$0 sm:$0xff] (!%p164_p2) }
   0x8   : > { %967 = vmatprep.subr.bf16.mxu0 (!%p164_p2), %v966_v3 }
   0x9   : > { %969 = vmatpush3.bf16.msra.mxu0 (!%p164_p2), %v966_v3  ;;  %971 = vmatprep.subr.bf16.mxu1 (!%p164_p2), %v970_v7 }
   0xa   : > { %973 = vmatpush3.bf16.msra.mxu1 (!%p164_p2), %v970_v7 }
   0xb   : > { %975 = vmatprep.subr.bf16.mxu1 (!%p164_p2), %v974_v8 }
   0xd   : > { %s1338_s21 = smov (!%p190_p3, %s813_s21), 31 }
   0xe   : > { %s814_s30 = sshll.u32 %s1338_s21, 3  ;;  %977 = vmatpush3.bf16.msra.mxu1 %v974_v8 }
   0xf   : > { %s1117_s7 = scalar_lea.vmem %s1330_s0, %s814_s30  ;;  %s1235_s12 = scalar_lea.vmem %s1334_s4, %s814_s30 }
  0x10   : > { %v201_v9 = vld [vmem:[%s1117_s7] sm:$0xff]  ;;  %v202_v10 = vld [vmem:[%s1117_s7 + $0x8] sm:$0xff]  ;;  %v203_v11 = vld [vmem:[%s1117_s7 + $0x10] sm:$0xff] }
  0x11   : > { %910 = vmatprep.mubr.msk.f32.mxu0 %vm219_vm0, %v201_v9  ;;  %v204_v12 = vld [vmem:[%s1117_s7 + $0x18] sm:$0xff]  ;;  %v205_v13 = vld [vmem:[%s1117_s7 + $0x20] sm:$0xff]  ;;  %v206_v14 = vld [vmem:[%s1117_s7 + $0x28] sm:$0xff] }
  0x12   : > { %911 = vmatmul.mubr.msk.f32.vlgmr.msra.gmra.mrb[0].mxu0 %vm219_vm0, %v202_v10  ;;  %v207_v15 = vld [vmem:[%s1117_s7 + $0x30] sm:$0xff]  ;;  %v208_v16 = vld [vmem:[%s1117_s7 + $0x38] sm:$0xff]  ;;  %v209_v17 = vld [vmem:[%s1117_s7 + $0x40] sm:$0xff] }
  0x13   : > { %913 = vmatprep.mubr.msk.f32.mxu0 %vm219_vm0, %v203_v11  ;;  %v210_v18 = vld [vmem:[%s1117_s7 + $0x48] sm:$0xff]  ;;  %v211_v19 = vld [vmem:[%s1117_s7 + $0x50] sm:$0xff]  ;;  %v212_v20 = vld [vmem:[%s1117_s7 + $0x58] sm:$0xff] }
  0x14   : > { %v213_v21 = vld [vmem:[%s1117_s7 + $0x60] sm:$0xff]  ;;  %v214_v22 = vld [vmem:[%s1117_s7 + $0x68] sm:$0xff]  ;;  %v215_v23 = vld [vmem:[%s1117_s7 + $0x70] sm:$0xff] }
  0x15   : > { %v216_v24 = vld [vmem:[%s1117_s7 + $0x78] sm:$0xff] }
  0x16   : > { %914 = vmatmul.mubr.msk.f32.gmra.mrb[2].mxu0 %vm219_vm0, %v204_v12  ;;  %v619_v12 = vand.u32 127, %v618_v1 }
  0x17   : > { %916 = vmatprep.mubr.msk.f32.mxu0 %vm219_vm0, %v205_v13 }
  0x18   : > { %vm620_vm2 = vcmp.eq.s32.totalorder %v619_v12, 0  ;;  %vm621_vm3 = vcmp.eq.s32.totalorder %v619_v12, 6 }
  0x19   : > { %vm1223_vm4 = vmor %vm620_vm2, %vm621_vm3 }
  0x1a   : > { %917 = vmatmul.mubr.msk.f32.gmra.mrb[4].mxu0 %vm219_vm0, %v206_v14 }
  0x1b   : > { %919 = vmatprep.mubr.msk.f32.mxu0 %vm219_vm0, %v207_v15 }
  0x1e   : > { %920 = vmatmul.mubr.msk.f32.gmra.mrb[6].mxu0 %vm219_vm0, %v208_v16 }
  0x1f   : > { %922 = vmatprep.mubr.msk.f32.mxu0 %vm219_vm0, %v209_v17 }
  0x22   : > { %923 = vmatmul.mubr.msk.f32.gmra.mrb[8].mxu0 %vm219_vm0, %v210_v18 }
  0x23   : > { %925 = vmatprep.mubr.msk.f32.mxu0 %vm219_vm0, %v211_v19 }
  0x26   : > { %926 = vmatmul.mubr.msk.f32.gmra.mrb[10].mxu0 %vm219_vm0, %v212_v20 }
  0x27   : > { %928 = vmatprep.mubr.msk.f32.mxu0 %vm219_vm0, %v213_v21 }
  0x2a   : > { %929 = vmatmul.mubr.msk.f32.gmra.mrb[12].mxu0 %vm219_vm0, %v214_v22 }
  0x2b   : > { %931 = vmatprep.mubr.msk.f32.mxu0 %vm219_vm0, %v215_v23 }
  0x2e   : > { %932 = vmatmul.mubr.msk.f32.gmra.mrb[14].mxu0 %vm219_vm0, %v216_v24 }
  0xe5   : > { %v912_v25 = vpop.f32.mrb[0].mxu0 }
  0xe6   : > { %v334_v26 = vpop.f32.mrb[1].mxu0 }
  0xe7   : > { %942 = vmatprep.mubr.msk.f32.mxu1 %vm424_vm1, %v334_v26 }
  0xe8   : > { %943 = vmatmul.mubr.msk.f32.vlgmr.msra.gmra.mrb[0].mxu1 %vm424_vm1, %v912_v25 }
  0xe9   : > { %v915_v27 = vpop.f32.mrb[2].mxu0 }
  0xea   : > { %v344_v28 = vpop.f32.mrb[3].mxu0 }
  0xeb   : > { %945 = vmatprep.mubr.msk.f32.mxu1 %vm424_vm1, %v344_v28 }
  0xec   : > { %946 = vmatmul.mubr.msk.f32.gmra.mrb[2].mxu1 %vm424_vm1, %v915_v27 }
  0xed   : > { %v918_v29 = vpop.f32.mrb[4].mxu0 }
  0xee   : > { %v354_v30 = vpop.f32.mrb[5].mxu0 }
  0xef   : > { %948 = vmatprep.mubr.msk.f32.mxu1 %vm424_vm1, %v354_v30 }
  0xf0   : > { %949 = vmatmul.mubr.msk.f32.gmra.mrb[4].mxu1 %vm424_vm1, %v918_v29 }
  0xf1   : > { %v921_v31 = vpop.f32.mrb[6].mxu0 }
  0xf2   : > { %v364_v32 = vpop.f32.mrb[7].mxu0 }
  0xf3   : > { %951 = vmatprep.mubr.msk.f32.mxu1 %vm424_vm1, %v364_v32 }
  0xf4   : > { %952 = vmatmul.mubr.msk.f32.gmra.mrb[6].mxu1 %vm424_vm1, %v921_v31 }
  0xf5   : > { %v924_v33 = vpop.f32.mrb[8].mxu0 }
  0xf6   : > { %v374_v34 = vpop.f32.mrb[9].mxu0 }
  0xf7   : > { %954 = vmatprep.mubr.msk.f32.mxu1 %vm424_vm1, %v374_v34 }
  0xf8   : > { %955 = vmatmul.mubr.msk.f32.gmra.mrb[8].mxu1 %vm424_vm1, %v924_v33 }
  0xf9   : > { %v927_v35 = vpop.f32.mrb[10].mxu0 }
  0xfa   : > { %v384_v36 = vpop.f32.mrb[11].mxu0 }
  0xfb   : > { %957 = vmatprep.mubr.msk.f32.mxu1 %vm424_vm1, %v384_v36 }
  0xfc   : > { %958 = vmatmul.mubr.msk.f32.gmra.mrb[10].mxu1 %vm424_vm1, %v927_v35 }
  0xfd   : > { %v930_v37 = vpop.f32.mrb[12].mxu0 }
  0xfe   : > { %v394_v38 = vpop.f32.mrb[13].mxu0 }
  0xff   : > { %960 = vmatprep.mubr.msk.f32.mxu1 %vm424_vm1, %v394_v38 }
 0x100   : > { %961 = vmatmul.mubr.msk.f32.gmra.mrb[12].mxu1 %vm424_vm1, %v930_v37 }
 0x101   : > { %v933_v39 = vpop.f32.mrb[14].mxu0 }
 0x102   : > { %v404_v40 = vpop.f32.mrb[15].mxu0 }
 0x103   : > { %963 = vmatprep.mubr.msk.f32.mxu1 %vm424_vm1, %v404_v40 }
 0x104   : > { %964 = vmatmul.mubr.msk.f32.gmra.mrb[14].mxu1 %vm424_vm1, %v933_v39 }
 0x1bb   : > { %v944_v42 = vpop.f32.mrb[0].mxu1 }
 0x1bc   : > { %v1173_v43 = vadd.f32 %v944_v42, %v1170_v41  ;;  %v539_v44 = vpop.f32.mrb[1].mxu1 }
 0x1bd   : > { %v1176_v45 = vadd.f32 %v1170_v41, %v539_v44 }
 0x1be   : > { %v851_v46 = vmul.f32 -1.442695, %v1173_v43 }
 0x1bf   : > { %v850_v47 = vmul.f32 -1.442695, %v1176_v45  ;;  %v947_v48 = vpop.f32.mrb[2].mxu1 }
 0x1c0   : > { %986 = vpow2.f32 %v851_v46  ;;  %v1181_v49 = vadd.f32 %v947_v48, %v1170_v41  ;;  %v549_v50 = vpop.f32.mrb[3].mxu1 }
 0x1c1   : > { %988 = vpow2.f32 %v850_v47  ;;  %v1184_v51 = vadd.f32 %v1170_v41, %v549_v50 }
 0x1c2   : > { %v853_v52 = vmul.f32 -1.442695, %v1181_v49 }
 0x1c3   : > { %v852_v53 = vmul.f32 -1.442695, %v1184_v51  ;;  %v950_v54 = vpop.f32.mrb[4].mxu1 }
 0x1c4   : > { %990 = vpow2.f32 %v853_v52  ;;  %v1189_v55 = vadd.f32 %v950_v54, %v1170_v41  ;;  %v559_v56 = vpop.f32.mrb[5].mxu1 }
 0x1c5   : > { %992 = vpow2.f32 %v852_v53  ;;  %v1192_v57 = vadd.f32 %v1170_v41, %v559_v56 }
 0x1c6   : > { %v855_v58 = vmul.f32 -1.442695, %v1189_v55 }
 0x1c7   : > { %v854_v59 = vmul.f32 -1.442695, %v1192_v57  ;;  %v953_v60 = vpop.f32.mrb[6].mxu1 }
 0x1c8   : > { %994 = vpow2.f32 %v855_v58  ;;  %v1197_v61 = vadd.f32 %v953_v60, %v1170_v41  ;;  %v569_v62 = vpop.f32.mrb[7].mxu1 }
 0x1c9   : > { %996 = vpow2.f32 %v854_v59  ;;  %v1200_v63 = vadd.f32 %v1170_v41, %v569_v62 }
 0x1ca   : > { %v987_v0 = vpop.eup %986  ;;  %v857_v2 = vmul.f32 -1.442695, %v1197_v61 }
 0x1cb   : > { %v989_v3 = vpop.eup %988  ;;  %v672_v4 = vadd.f32 1.0, %v987_v0  ;;  %v856_v5 = vmul.f32 -1.442695, %v1200_v63  ;;  %v956_v6 = vpop.f32.mrb[8].mxu1 }
 0x1cc   : > { %v671_v7 = vadd.f32 1.0, %v989_v3  ;;  %998 = vpow2.f32 %v857_v2  ;;  %v1205_v8 = vadd.f32 %v956_v6, %v1170_v41  ;;  %v579_v9 = vpop.f32.mrb[9].mxu1 }
 0x1cd   : > { %1000 = vrcp.f32 %v672_v4  ;;  %v1208_v10 = vadd.f32 %v1170_v41, %v579_v9 }
 0x1ce   : > { %v991_v11 = vpop.eup %990  ;;  %1002 = vrcp.f32 %v671_v7  ;;  %v859_v13 = vmul.f32 -1.442695, %v1205_v8 }
 0x1cf   : > { %v993_v14 = vpop.eup %992  ;;  %v674_v15 = vadd.f32 1.0, %v991_v11  ;;  %1004 = vpow2.f32 %v856_v5  ;;  %v858_v16 = vmul.f32 -1.442695, %v1208_v10  ;;  %v959_v17 = vpop.f32.mrb[10].mxu1 }
 0x1d0   : > { %v673_v18 = vadd.f32 1.0, %v993_v14  ;;  %1006 = vpow2.f32 %v859_v13  ;;  %v1213_v19 = vadd.f32 %v959_v17, %v1170_v41  ;;  %v589_v20 = vpop.f32.mrb[11].mxu1 }
 0x1d1   : > { %1008 = vrcp.f32 %v674_v15  ;;  %v1216_v21 = vadd.f32 %v1170_v41, %v589_v20 }
 0x1d2   : > { %v995_v22 = vpop.eup %994  ;;  %1010 = vrcp.f32 %v673_v18  ;;  %v861_v23 = vmul.f32 -1.442695, %v1213_v19 }
 0x1d3   : > { %v997_v24 = vpop.eup %996  ;;  %v676_v25 = vadd.f32 1.0, %v995_v22  ;;  %1012 = vpow2.f32 %v858_v16  ;;  %v860_v26 = vmul.f32 -1.442695, %v1216_v21  ;;  %v962_v27 = vpop.f32.mrb[12].mxu1 }
 0x1d4   : > { %v675_v28 = vadd.f32 1.0, %v997_v24  ;;  %1014 = vpow2.f32 %v861_v23  ;;  %v1221_v29 = vadd.f32 %v962_v27, %v1170_v41  ;;  %v599_v30 = vpop.f32.mrb[13].mxu1 }
 0x1d5   : > { %1016 = vrcp.f32 %v676_v25  ;;  %v1228_v32 = vadd.f32 %v1170_v41, %v599_v30 }
 0x1d6   : > { %v999_v33 = vpop.eup %998  ;;  %1018 = vrcp.f32 %v675_v28  ;;  %v863_v34 = vmul.f32 -1.442695, %v1221_v29 }
 0x1d7   : > { %v1001_v35 = vpop.eup %1000  ;;  %v678_v36 = vadd.f32 1.0, %v999_v33  ;;  %1020 = vpow2.f32 %v860_v26  ;;  %v862_v37 = vmul.f32 -1.442695, %v1228_v32  ;;  %v965_v38 = vpop.f32.mrb[14].mxu1 }
 0x1d8   : > { %v1003_v39 = vpop.eup %1002  ;;  %v720_v40 = vsel %vm1223_vm4, %v1001_v35, %v1173_v43  ;;  %1022 = vpow2.f32 %v863_v34  ;;  %v1243_v42 = vadd.f32 %v965_v38, %v1170_v41  ;;  %v609_v44 = vpop.f32.mrb[15].mxu1 }
 0x1d9   : > { %v1005_v46 = vpop.eup %1004  ;;  %737 = vst.msk [vmem:[%s1235_s12 + $0x8] sm:$0xff] %vm735_vm5, %v720_v40  ;;  %v719_v47 = vsel %vm1223_vm4, %v1003_v39, %v1176_v45  ;;  %1024 = vrcp.f32 %v678_v36  ;;  %v1251_v48 = vadd.f32 %v1170_v41, %v609_v44 }
 0x1da   : > { %v1007_v50 = vpop.eup %1006  ;;  %736 = vst.msk [vmem:[%s1235_s12] sm:$0xff] %vm735_vm5, %v719_v47  ;;  %v677_v43 = vadd.f32 1.0, %v1005_v46  ;;  %1026 = vpow2.f32 %v862_v37  ;;  %v865_v52 = vmul.f32 -1.442695, %v1243_v42 }
 0x1db   : > { %v1009_v53 = vpop.eup %1008  ;;  %v680_v54 = vadd.f32 1.0, %v1007_v50  ;;  %v864_v56 = vmul.f32 -1.442695, %v1251_v48 }
 0x1dc   : > { %v1011_v58 = vpop.eup %1010  ;;  %v722_v45 = vsel %vm1223_vm4, %v1009_v53, %v1181_v49  ;;  %1028 = vrcp.f32 %v677_v43 }
 0x1dd   : > { %v1013_v41 = vpop.eup %1012  ;;  %739 = vst.msk [vmem:[%s1235_s12 + $0x18] sm:$0xff] %vm735_vm5, %v722_v45  ;;  %v721_v59 = vsel %vm1223_vm4, %v1011_v58, %v1184_v51  ;;  %1030 = vrcp.f32 %v680_v54 }
 0x1de   : > { %v1015_v60 = vpop.eup %1014  ;;  %738 = vst.msk [vmem:[%s1235_s12 + $0x10] sm:$0xff] %vm735_vm5, %v721_v59  ;;  %v679_v62 = vadd.f32 1.0, %v1013_v41  ;;  %1032 = vpow2.f32 %v865_v52 }
 0x1df   : > { %v1017_v0 = vpop.eup %1016  ;;  %v682_v1 = vadd.f32 1.0, %v1015_v60  ;;  %1034 = vpow2.f32 %v864_v56 }
 0x1e0   : > { %v1019_v49 = vpop.eup %1018  ;;  %v724_v2 = vsel %vm1223_vm4, %v1017_v0, %v1189_v55  ;;  %1036 = vrcp.f32 %v679_v62 }
 0x1e1   : > { %v1021_v3 = vpop.eup %1020  ;;  %741 = vst.msk [vmem:[%s1235_s12 + $0x28] sm:$0xff] %vm735_vm5, %v724_v2  ;;  %v723_v51 = vsel %vm1223_vm4, %v1019_v49, %v1192_v57  ;;  %1038 = vrcp.f32 %v682_v1 }
 0x1e2   : > { %v1023_v4 = vpop.eup %1022  ;;  %740 = vst.msk [vmem:[%s1235_s12 + $0x20] sm:$0xff] %vm735_vm5, %v723_v51  ;;  %v681_v5 = vadd.f32 1.0, %v1021_v3 }
 0x1e3   : > { %v1025_v6 = vpop.eup %1024  ;;  %v684_v7 = vadd.f32 1.0, %v1023_v4 }
 0x1e4   : > { %v1027_v9 = vpop.eup %1026  ;;  %v726_v55 = vsel %vm1223_vm4, %v1025_v6, %v1197_v61  ;;  %1040 = vrcp.f32 %v681_v5 }
 0x1e5   : > { %743 = vst.msk [vmem:[%s1235_s12 + $0x38] sm:$0xff] %vm735_vm5, %v726_v55  ;;  %1042 = vrcp.f32 %v684_v7  ;;  %v683_v11 = vadd.f32 1.0, %v1027_v9 }
 0x1e6   : > { %v1029_v57 = vpop.eup %1028 }
 0x1e7   : > { %v1031_v12 = vpop.eup %1030  ;;  %v725_v13 = vsel %vm1223_vm4, %v1029_v57, %v1200_v63  ;;  %1044 = vrcp.f32 %v683_v11 }
 0x1e8   : > { %v1033_v14 = vpop.eup %1032  ;;  %742 = vst.msk [vmem:[%s1235_s12 + $0x30] sm:$0xff] %vm735_vm5, %v725_v13  ;;  %v728_v61 = vsel %vm1223_vm4, %v1031_v12, %v1205_v8 }
 0x1e9   : > { %v1035_v15 = vpop.eup %1034  ;;  %745 = vst.msk [vmem:[%s1235_s12 + $0x48] sm:$0xff] %vm735_vm5, %v728_v61  ;;  %v686_v16 = vadd.f32 1.0, %v1033_v14 }
 0x1ea   : > { %v1037_v17 = vpop.eup %1036  ;;  %v685_v18 = vadd.f32 1.0, %v1035_v15 }
 0x1eb   : > { %v1039_v20 = vpop.eup %1038  ;;  %v727_v63 = vsel %vm1223_vm4, %v1037_v17, %v1208_v10  ;;  %1046 = vrcp.f32 %v686_v16 }
 0x1ec   : > { %744 = vst.msk [vmem:[%s1235_s12 + $0x40] sm:$0xff] %vm735_vm5, %v727_v63  ;;  %v730_v8 = vsel %vm1223_vm4, %v1039_v20, %v1213_v19  ;;  %1048 = vrcp.f32 %v685_v18 }
 0x1ed   : > { %747 = vst.msk [vmem:[%s1235_s12 + $0x58] sm:$0xff] %vm735_vm5, %v730_v8 }
 0x1ee   : > { %v1041_v22 = vpop.eup %1040 }
 0x1ef   : > { %v1043_v23 = vpop.eup %1042  ;;  %v729_v24 = vsel %vm1223_vm4, %v1041_v22, %v1216_v21 }
 0x1f0   : > { %746 = vst.msk [vmem:[%s1235_s12 + $0x50] sm:$0xff] %vm735_vm5, %v729_v24  ;;  %v732_v10 = vsel %vm1223_vm4, %v1043_v23, %v1221_v29 }
 0x1f1   : > { %v1045_v25 = vpop.eup %1044  ;;  %749 = vst.msk [vmem:[%s1235_s12 + $0x68] sm:$0xff] %vm735_vm5, %v732_v10 }
 0x1f2   : > { %v731_v19 = vsel %vm1223_vm4, %v1045_v25, %v1228_v32 }
 0x1f3   : > { %748 = vst.msk [vmem:[%s1235_s12 + $0x60] sm:$0xff] %vm735_vm5, %v731_v19 }
 0x1f5   : > { %v1047_v26 = vpop.eup %1046 }
 0x1f6   : > { %v1049_v27 = vpop.eup %1048  ;;  %v734_v21 = vsel %vm1223_vm4, %v1047_v26, %v1243_v42 }
 0x1f7   : > { %751 = vst.msk [vmem:[%s1235_s12 + $0x78] sm:$0xff] %vm735_vm5, %v734_v21  ;;  %v733_v28 = vsel %vm1223_vm4, %v1049_v27, %v1251_v48 }
 0x1f8   : > { %750 = vst.msk [vmem:[%s1235_s12 + $0x70] sm:$0xff] %vm735_vm5, %v733_v28 }
 0x1f9 PF: > { %s14_s15 = sadd.s32 1, %s1056_s15  }
 0x1fa   : > { %p11_p4 = scmp.ge.s32.totalorder %s14_s15, 4  }
 0x1fc   :  { %13 = sbr.rel (!%p11_p4) target bundleno = 1 (0x1), region = 66 }

</bundles_post_ra>
